<compile_context>
chip_gen: v5e
topology: v5e:2x2
jax: 0.10.0
libtpu: 0.0.40
codegen_flags: <defaults>
</compile_context>

<pallas_src>
import functools

import jax
import jax.numpy as jnp
from jax import lax
from jax.experimental import pallas as pl
from jax.experimental.pallas import tpu as pltpu


def _scatter_kernel(offs_ref, cells_ref, feats_ref, o_ref, tile_ref, *,
                    tile_s, num_channels):
    """Build one (C, tile_s) block of the dense NCHW BEV image.

    offs_ref:  SMEM (B*T + 1,) int32 — start index into the sorted pillar
               list for every flat (batch, tile) pair; tile k owns the sorted
               pillars [offs[k], offs[k+1]).
    cells_ref: SMEM (M,) int32       — flat spatial cell (z + y*nx + x) of
               each sorted pillar.
    feats_ref: VMEM (M, C)           — sorted pillar features; constant block
               index -> DMA'd from HBM once and kept resident.
    o_ref:     VMEM (C, tile_s)      — output block, written once per step by
               the pipelined out_spec (coalesced, lane-dense).
    tile_ref:  VMEM (tile_s, c_pad)  — staging tile in (cell, channel)
               orientation so per-pillar placement is a dynamic *sublane*
               store (cheap VMEM copy); transposed once before writeback.
    """
    b = pl.program_id(0)
    t = pl.program_id(1)
    num_tiles = pl.num_programs(1)
    flat = b * num_tiles + t
    start = offs_ref[flat]
    stop = offs_ref[flat + 1]
    cell0 = t * tile_s

    # Fused zero-fill: cells with no pillar stay 0 without a separate pass
    # over the dense slab in the wrapper.
    tile_ref[...] = jnp.zeros_like(tile_ref)

    # Place this tile's pillar rows; they are contiguous in the sorted order.
    # Destinations are unique (pcdet guarantee), so placement order is moot.
    def place(i, carry):
        local = cells_ref[i] - cell0
        tile_ref[pl.ds(local, 1), :num_channels] = feats_ref[pl.ds(i, 1), :]
        return carry

    lax.fori_loop(start, stop, place, 0)

    # One small in-kernel transpose (XLU) instead of a whole-slab XLA
    # transpose in the wrapper; the store below is a single lane-dense block.
    o_ref[...] = tile_ref[...].T[:num_channels, :]


def _choose_tile(S, requested=None, cap=2048):
    """Spatial tile width (lane dim of each output block) and padded S."""
    if requested is not None:
        tile_s = requested
    elif S <= cap:
        tile_s = S
    else:
        tile_s = 0
        # Largest multiple of 128 that divides S -> lane-dense blocks, no pad.
        for cand in range(128, cap + 1, 128):
            if S % cand == 0:
                tile_s = cand
        if tile_s == 0:
            tile_s = 1024  # fall back to padding the spatial axis
    num_tiles = -(-S // tile_s)
    return tile_s, num_tiles * tile_s


def pointpillar_scatter(pillar_features, voxel_coords, *, batch_size,
                        num_bev_features, nx, ny, nz, tile_s=None):
    """Returns spatial_features of shape (batch_size, num_bev_features*nz, ny, nx)."""
    assert nz == 1
    M, C = pillar_features.shape
    assert C == num_bev_features
    assert M > 0
    S = nz * ny * nx
    assert batch_size * S <= 2**31 - 1, "flat destination would overflow int32"

    tile_s, S_pad = _choose_tile(S, tile_s)
    assert tile_s % 128 == 0 or tile_s == S_pad, (tile_s, S_pad)
    T = S_pad // tile_s
    c_pad = ((C + 127) // 128) * 128

    coords = voxel_coords.astype(jnp.int32)
    cell = coords[:, 1] + coords[:, 2] * nx + coords[:, 3]      # z + y*nx + x
    bidx = coords[:, 0]

    # Sort pillars by destination (batch, cell); O(M) payload, tiny next to
    # the dense slab. (No jnp.pad of the features any more.)
    order = jnp.argsort(bidx * S + cell)
    feats_s = pillar_features[order]
    cells_s = cell[order]

    # Start offset of every flat (batch, tile) pair in the sorted pillar list.
    tile_key = bidx[order] * T + cells_s // tile_s               # non-decreasing
    offs = jnp.searchsorted(
        tile_key, jnp.arange(batch_size * T + 1, dtype=jnp.int32)
    ).astype(jnp.int32)

    # VMEM budget: resident sorted feats (x2 buffers), double-buffered output
    # blocks, staging tile. Capped at 64 MiB so the same sizing works on v7x.
    elt = pillar_features.dtype.itemsize
    vmem_need = (2 * M * max(C, 128) * elt
                 + 2 * C * tile_s * elt
                 + tile_s * c_pad * elt
                 + (2 << 20))
    vmem_limit = int(min(max(vmem_need, 32 << 20), 64 << 20))

    kernel = functools.partial(_scatter_kernel, tile_s=tile_s, num_channels=C)
    out = pl.pallas_call(
        kernel,
        out_shape=jax.ShapeDtypeStruct((batch_size, C, S_pad),
                                       pillar_features.dtype),
        grid_spec=pltpu.PrefetchScalarGridSpec(
            num_scalar_prefetch=2,                               # offs, cells -> SMEM
            grid=(batch_size, T),
            in_specs=[
                # Whole sorted feature array, constant block index -> fetched
                # from HBM once and resident in VMEM for the whole grid.
                pl.BlockSpec((M, C), lambda b, t, offs, cells: (0, 0)),
            ],
            out_specs=pl.BlockSpec((None, C, tile_s),
                                   lambda b, t, offs, cells: (b, 0, t)),
            scratch_shapes=[pltpu.VMEM((tile_s, c_pad), pillar_features.dtype)],
        ),
        compiler_params=pltpu.CompilerParams(
            # Each (batch, tile) step owns a disjoint output block -> both
            # axes parallel (lets v7x shard the grid across its 2 TCs).
            dimension_semantics=("parallel", "parallel"),
            vmem_limit_bytes=vmem_limit),
    )(offs, cells_s, feats_s)

    if S_pad != S:
        out = out[:, :, :S]                                      # rare fallback path
    # Free reshape: the kernel already produced NCHW (B, C, S) layout.
    return out.reshape(batch_size, C * nz, ny, nx)


def _reference_scatter(pillar_features, voxel_coords, *, batch_size,
                       num_bev_features, nx, ny, nz):
    """Pure-JAX reference matching the PyTorch forward."""
    S = nz * ny * nx
    coords = voxel_coords.astype(jnp.int32)
    flat = coords[:, 1] + coords[:, 2] * nx + coords[:, 3]
    b = coords[:, 0]
    out = jnp.zeros((batch_size, num_bev_features, S), pillar_features.dtype)
    out = out.at[b, :, flat].set(pillar_features)
    return out.reshape(batch_size, num_bev_features * nz, ny, nx)


if __name__ == "__main__":
    # Small, deterministic config (module-consistent): grid_size = (nx, ny, nz).
    # TODO(synk): the torch module derives batch_size from coords[:,0].max()
    # at runtime; here it is a static argument.
    nx, ny, nz = 32, 16, 1
    num_bev_features = 64
    batch_size = 2
    pillars_per_batch = 20
    M = batch_size * pillars_per_batch
    S = nz * ny * nx

    key = jax.random.PRNGKey(0)
    k_feat, k_c0, k_c1 = jax.random.split(key, 3)

    pillar_features = jax.random.normal(k_feat, (M, num_bev_features),
                                        dtype=jnp.float32)

    # Unique spatial cells per batch (scatter targets are unique, as in pcdet),
    # deliberately in shuffled order to exercise the sort.
    coords_list = []
    for bi, kb in enumerate([k_c0, k_c1]):
        cells = jax.random.permutation(kb, S)[:pillars_per_batch]
        y = cells // nx
        x = cells % nx
        z = jnp.zeros_like(x)
        bcol = jnp.full_like(x, bi)
        coords_list.append(jnp.stack([bcol, z, y, x], axis=1))
    voxel_coords = jnp.concatenate(coords_list, axis=0).astype(jnp.int32)

    ref = _reference_scatter(
        pillar_features, voxel_coords,
        batch_size=batch_size, num_bev_features=num_bev_features,
        nx=nx, ny=ny, nz=nz)

    # Exercise both the multi-tile path (tile_s=128 -> grid (2, 4)) and the
    # full-row-per-step path (tile_s=None -> tile_s=S, grid (2, 1)).
    for ts in (128, None):
        scatter_fn = jax.jit(functools.partial(
            pointpillar_scatter,
            batch_size=batch_size, num_bev_features=num_bev_features,
            nx=nx, ny=ny, nz=nz, tile_s=ts))
        out = jax.block_until_ready(scatter_fn(pillar_features, voxel_coords))
        assert out.shape == (batch_size, num_bev_features * nz, ny, nx), out.shape
        assert jnp.allclose(out, ref, atol=1e-6, rtol=1e-6), \
            f"mismatch vs reference (tile_s={ts})"

    print("KERNEL_OK")
</pallas_src>

<mosaic_0001>
module attributes {stable_mosaic.version = 11 : i64} {
  func.func @_scatter_kernel(%arg0: i32, %arg1: i32, %arg2: memref<9xi32, #tpu.memory_space<smem>>, %arg3: memref<40xi32, #tpu.memory_space<smem>>, %arg4: memref<40x64xf32, #tpu.memory_space<vmem>>, %arg5: memref<1x64x128xf32, #tpu.memory_space<vmem>>, %arg6: memref<128x128xf32, #tpu.memory_space<vmem>>) attributes {dimension_semantics = [#tpu.dimension_semantics<parallel>, #tpu.dimension_semantics<parallel>], iteration_bounds = array<i64: 2, 4>, scalar_prefetch = 2 : i64, scratch_operands = 1 : i64, tpu.core_type = #tpu.core_type<tc>, window_params = [{pipeline_mode = #tpu.pipeline_mode<synchronous>, transform_indices = @transform_0, window_bounds = array<i64: 40, 64>}, {transform_indices = @transform_1, window_bounds = array<i64: 1, 64, 128>}]} {
    %c4_i32 = arith.constant 4 : i32
    %0 = arith.muli %arg0, %c4_i32 : i32
    %1 = arith.addi %0, %arg1 : i32
    %2 = arith.index_cast %1 : i32 to index
    %3 = memref.load %arg2[%2] : memref<9xi32, #tpu.memory_space<smem>>
    %c1_i32 = arith.constant 1 : i32
    %4 = arith.addi %1, %c1_i32 : i32
    %5 = arith.index_cast %4 : i32 to index
    %6 = memref.load %arg2[%5] : memref<9xi32, #tpu.memory_space<smem>>
    %c128_i32 = arith.constant 128 : i32
    %7 = arith.muli %arg1, %c128_i32 : i32
    %cst = arith.constant 0.000000e+00 : f32
    %8 = vector.broadcast %cst : f32 to vector<128x128xf32>
    %c0 = arith.constant 0 : index
    %c0_0 = arith.constant 0 : index
    %9 = vector.load %arg6[%c0, %c0_0] : memref<128x128xf32, #tpu.memory_space<vmem>>, vector<128x128xf32>
    tpu.vector_store %arg6[%c0, %c0_0], %8 {strides = array<i32>} : memref<128x128xf32, #tpu.memory_space<vmem>>, vector<128x128xf32>,
    %c0_i32 = arith.constant 0 : i32
    %10 = arith.subi %6, %3 : i32
    %11 = arith.addi %3, %10 : i32
    %c1_i32_1 = arith.constant 1 : i32
    scf.for %arg7 = %3 to %11 step %c1_i32_1  : i32 {
      %18 = arith.index_cast %arg7 : i32 to index
      %19 = memref.load %arg3[%18] : memref<40xi32, #tpu.memory_space<smem>>
      %20 = arith.subi %19, %7 : i32
      %21 = arith.index_cast %arg7 : i32 to index
      %c0_7 = arith.constant 0 : index
      %22 = vector.load %arg4[%21, %c0_7] : memref<40x64xf32, #tpu.memory_space<vmem>>, vector<1x64xf32>
      %23 = arith.index_cast %20 : i32 to index
      %c0_8 = arith.constant 0 : index
      %24 = vector.load %arg6[%23, %c0_8] : memref<128x128xf32, #tpu.memory_space<vmem>>, vector<1x64xf32>
      tpu.vector_store %arg6[%23, %c0_8], %22 {strides = array<i32>} : memref<128x128xf32, #tpu.memory_space<vmem>>, vector<1x64xf32>,
    }
    %c0_2 = arith.constant 0 : index
    %c0_3 = arith.constant 0 : index
    %12 = vector.load %arg6[%c0_2, %c0_3] : memref<128x128xf32, #tpu.memory_space<vmem>>, vector<128x128xf32>
    %13 = tpu.transpose %12, [1, 0] : vector<128x128xf32> -> vector<128x128xf32>
    %14 = vector.extract_strided_slice %13 {offsets = [0, 0], sizes = [64, 128], strides = [1, 1]} : vector<128x128xf32> to vector<64x128xf32>
    %c0_4 = arith.constant 0 : index
    %c0_5 = arith.constant 0 : index
    %c0_6 = arith.constant 0 : index
    %15 = vector.load %arg5[%c0_4, %c0_5, %c0_6] : memref<1x64x128xf32, #tpu.memory_space<vmem>>, vector<1x64x128xf32>
    %16 = vector.shape_cast %15 : vector<1x64x128xf32> to vector<64x128xf32>
    %17 = vector.shape_cast %14 : vector<64x128xf32> to vector<1x64x128xf32>
    tpu.vector_store %arg5[%c0_4, %c0_5, %c0_6], %17 {strides = array<i32>} : memref<1x64x128xf32, #tpu.memory_space<vmem>>, vector<1x64x128xf32>,
    return
  }
  func.func @transform_0(%arg0: i32, %arg1: i32, %arg2: memref<9xi32, #tpu.memory_space<smem>>, %arg3: memref<40xi32, #tpu.memory_space<smem>>) -> (i32, i32) {
    %c0_i32 = arith.constant 0 : i32
    %c0_i32_0 = arith.constant 0 : i32
    %c0_i32_1 = arith.constant 0 : i32
    return %c0_i32, %c0_i32_0 : i32, i32
  }
  func.func @transform_1(%arg0: i32, %arg1: i32, %arg2: memref<9xi32, #tpu.memory_space<smem>>, %arg3: memref<40xi32, #tpu.memory_space<smem>>) -> (i32, i32, i32) {
    %c0_i32 = arith.constant 0 : i32
    %c0_i32_0 = arith.constant 0 : i32
    return %arg0, %c0_i32, %arg1 : i32, i32, i32
  }
}

</mosaic_0001>

<bundles_post_ra>
// kernel: custom-call.1
= control target key start
LH: loop header
LB: loop body
LE: loop exit
PB: predicated region body
PF: predicated region fallthrough
CT: control target
= control target key end

     0   :  { %s6_s0 = inlined_call_operand.vmem [shape: u32[9], index: 0, kind: output, shape index: {}]  }

// kernel: pointpillar_scatter.1
= control target key start
LH: loop header
LB: loop body
LE: loop exit
PB: predicated region body
PF: predicated region fallthrough
CT: control target
= control target key end

     0   :  { %s511_s18 = smov [#allocation4]   ;;  %s512_s19 = smov [#allocation5]   ;;  %s658_s0 = inlined_call_operand.vmem [shape: s32[9], index: 0, kind: input, shape index: {}]   ;;  %s659_s2 = inlined_call_operand.vmem [shape: f32[40,64], index: 2, kind: input, shape index: {}]   ;;  %s660_s3 = inlined_call_operand.vmem [shape: f32[2,64,512], index: 3, kind: output, shape index: {}]   ;;  %s661_s1 = inlined_call_operand.vmem [shape: s32[40], index: 1, kind: input, shape index: {}]  }
   0x1   :  { %s9_s14 = sshll.u32 %s658_s0, 4  ;;  %s14_s17 = sshll.u32 %s661_s1, 4  ;;  %s10_s14 = int_to_ptr.vmem [resolvable:$true] %s9_s14  ;;  %s15_s17 = int_to_ptr.vmem [resolvable:$true] %s14_s17 }
   0x2   :  { %12 = dma.vmem_to_smem %s10_s14, 16, %s511_s18, [#allocation3] }
   0x3   :  { %17 = dma.vmem_to_smem %s15_s17, 16, %s512_s19, [#allocation3] }
   0x4   :  { %477 = dma.done.wait [#allocation3], 32 }
   0x5   :  { %478 = vsyncadd [#allocation3], 4294967264 }
   0x6   :  { %20 = sfence }
   0x7   :  { %s540_s20 = smov 0   ;;  %s542_s21 = smov 0  }
   0x8   :  { %s544_s22 = smov 0   ;;  %s546_s0 = smov 0  }
   0x9   :  { %s548_s23 = smov 0   ;;  %s550_s1 = smov 0  }
   0xa   :  { %s552_s24 = smov 0  }
   0xb LB: > { %s35_s25 = sadd.s32 1, %s497_s23  ;;  %s38_s26 = sadd.s32 1, %s501_s1  ;;  %s505_s24 = sphi %s552_s24, %s26_s24   ;;  %s501_s1 = sphi %s550_s1, %s668_s1   ;;  %s497_s23 = sphi %s548_s23, %s667_s23   ;;  %s493_s0 = sphi %s546_s0, %s666_s0   ;;  %s489_s22 = sphi %s544_s22, %s665_s22   ;;  %s485_s21 = sphi %s542_s21, %s664_s21   ;;  %s481_s20 = sphi %s540_s20, %s663_s20  }
   0xc   : > { %p36_p0 = scmp.ge.s32.totalorder %s35_s25, 4  ;;  %s342_s27 = sadd.s32 4294967295, %s505_s24  }
   0xd   : > { %p78_p1 = scmp.ne.s32.totalorder %s485_s21, %s481_s20  ;;  %p79_p2 = scmp.eq.s32.totalorder %s342_s27, 7 }
   0xe   : > { %s670_s25 = smov (%p36_p0, %s35_s25), 0  ;;  %s672_s26 = smov (!%p36_p0, %s38_s26), %s501_s1 }
   0xf   : > { %s64_s28 = ssub.s32 %s497_s23, %s670_s25  ;;  %p40_p3 = scmp.ge.s32.totalorder %s672_s26, 2 }
  0x10   : > { %p345_p4 = scmp.ge.s32.totalorder %s505_s24, 1  ;;  %p586_p5 = por %p79_p2, %p78_p1 }
  0x11   : > { %p106_p6 = scmp.lt.s32.totalorder %s505_s24, 9  ;;  %s674_s26 = smov (%p40_p3, %s672_s26), 0 }
  0x12   : > { %s63_s30 = ssub.s32 %s501_s1, %s674_s26  ;;  %s68_s5 = sadd.s32 1, %s485_s21 }
  0x13   : > { %p107_p7 = pnand %p345_p4, %p106_p6  ;;  %s65_s4 = sor.u32 %s64_s28, %s63_s30 }
  0x14   : > { %p66_p8 = scmp.eq.s32.totalorder %s65_s4, 0  ;;  %s117_s7 = sand.u32 (!%p107_p7), 1, %s481_s20  }
  0x15   : > { %110 = sbr.rel (%p107_p7) target bundleno = 289 (0x121), region = 24  ;;  %s347_s8 = sshll.u32 (!%p107_p7), %s493_s0, 2 }
  0x16   : > { %s597_s6 = scalar_select %p66_p8, %s485_s21, %s68_s5  }
  0x17   : > { %s346_s9 = sshll.u32 (!%p107_p7), %s117_s7, 6  ;;  %s121_s10 = sadd.s32 (!%p107_p7), %s489_s22, %s347_s8 }
  0x18   : > { %s122_s11 = sld [smem:[#allocation4 + %s121_s10]] (!%p107_p7)   ;;  %s123_s12 = sadd.s32 (!%p107_p7), 1, %s121_s10 }
  0x19   : > { %s348_s13 = sshll.u32 (!%p107_p7), %s489_s22, 7  ;;  %s603_s14 = sld [smem:[#allocation4 + %s123_s12]] (!%p107_p7) }
  0x1a   : > { %v513_v0 = vmov 0.0   ;;  %s605_s15 = scalar_lea.vmem [#allocation6], %s346_s9 }
  0x1b   : > { %126 = vst [vmem:[#allocation2] sm:$0xff] %v513_v0 }
  0x1c   : > { %127 = vst [vmem:[#allocation2 + $0x8] sm:$0xff] %v513_v0 }
  0x1d   : > { %128 = vst [vmem:[#allocation2 + $0x10] sm:$0xff] %v513_v0 }
  0x1e   : > { %129 = vst [vmem:[#allocation2 + $0x18] sm:$0xff] %v513_v0 }
  0x1f   : > { %130 = vst [vmem:[#allocation2 + $0x20] sm:$0xff] %v513_v0  ;;  %p312_p9 = scmp.ge.s32.totalorder %s122_s11, %s603_s14 }
  0x20   : > { %131 = vst [vmem:[#allocation2 + $0x28] sm:$0xff] %v513_v0  ;;  %s507_s16 = smov (!%p312_p9), %s122_s11  }
  0x21   : > { %132 = vst [vmem:[#allocation2 + $0x30] sm:$0xff] %v513_v0 }
  0x22   : > { %133 = vst [vmem:[#allocation2 + $0x38] sm:$0xff] %v513_v0 }
  0x23   : > { %134 = vst [vmem:[#allocation2 + $0x40] sm:$0xff] %v513_v0 }
  0x24   : > { %135 = vst [vmem:[#allocation2 + $0x48] sm:$0xff] %v513_v0 }
  0x25   : > { %136 = vst [vmem:[#allocation2 + $0x50] sm:$0xff] %v513_v0 }
  0x26   : > { %137 = vst [vmem:[#allocation2 + $0x58] sm:$0xff] %v513_v0  ;;  %313 = sbr.rel (%p312_p9) target bundleno = 52 (0x34), region = 92 }
  0x27   : > { %138 = vst [vmem:[#allocation2 + $0x60] sm:$0xff] %v513_v0 }
  0x28   : > { %139 = vst [vmem:[#allocation2 + $0x68] sm:$0xff] %v513_v0 }
  0x29   : > { %140 = vst [vmem:[#allocation2 + $0x70] sm:$0xff] %v513_v0 }
  0x2a   : > { %141 = vst [vmem:[#allocation2 + $0x78] sm:$0xff] %v513_v0 }
  0x2b LB: >> { %s148_s17 = sld [smem:[#allocation5 + %s509_s16]]  ;;  %s150_s20 = scalar_lea.vmem %s659_s2, %s509_s16  ;;  %vm153_vm0 = vcmask 516096   ;;  %s509_s16 = sphi %s507_s16, %s145_s16  }
  0x2c   : >> { %v151_v1 = vld [vmem:[%s150_s20] sm:$0x1]  ;;  %s145_s16 = sadd.s32 1, %s509_s16  }
  0x2d   : >> { %p144_p10 = scmp.ge.s32.totalorder %s145_s16, %s603_s14 }
  0x2f   : > { %147 = sbr.rel (!%p144_p10) target bundleno = 43 (0x2b), region = 98 }
  0x31   : >> { %s149_s27 = ssub.s32 %s148_s17, %s348_s13 }
  0x32   : >> { %s152_s28 = scalar_lea.vmem [#allocation2], %s149_s27 }
  0x33   : >> { %154 = vst.msk [vmem:[%s152_s28] sm:$0x1] %vm153_vm0, %v151_v1 }
  0x34 PF: > { %s350_s30 = sshll.u32 (%p586_p5), %s493_s0, 5 }
  0x35   : > { %s219_s4 = sadd.s32 (%p586_p5), %s489_s22, %s350_s30 }
  0x36   : > { %s351_s5 = sshll.u32 (%p586_p5), %s219_s4, 3 }
  0x37   : > { %s221_s29 = scalar_lea.vmem (%p586_p5), %s660_s3, %s351_s5 }
  0x3a   : > { %v155_v2 = vld [vmem:[#allocation2] sm:$0xff]  ;;  %v156_v3 = vld [vmem:[#allocation2 + $0x8] sm:$0xff]  ;;  %v157_v4 = vld [vmem:[#allocation2 + $0x10] sm:$0xff] }
  0x3b   : > { %171 = vxpose.xlu0.b32.start [1/16] (narrow) %v155_v2, 64  ;;  %v158_v5 = vld [vmem:[#allocation2 + $0x18] sm:$0xff]  ;;  %v159_v6 = vld [vmem:[#allocation2 + $0x20] sm:$0xff]  ;;  %v160_v7 = vld [vmem:[#allocation2 + $0x28] sm:$0xff] }
  0x3c   : > { %v161_v8 = vld [vmem:[#allocation2 + $0x30] sm:$0xff]  ;;  %v162_v9 = vld [vmem:[#allocation2 + $0x38] sm:$0xff]  ;;  %v163_v10 = vld [vmem:[#allocation2 + $0x40] sm:$0xff] }
  0x3d   : > { %v164_v11 = vld [vmem:[#allocation2 + $0x48] sm:$0xff]  ;;  %v165_v12 = vld [vmem:[#allocation2 + $0x50] sm:$0xff]  ;;  %v166_v13 = vld [vmem:[#allocation2 + $0x58] sm:$0xff] }
  0x3e   : > { %v167_v14 = vld [vmem:[#allocation2 + $0x60] sm:$0xff]  ;;  %v168_v15 = vld [vmem:[#allocation2 + $0x68] sm:$0xff]  ;;  %v169_v16 = vld [vmem:[#allocation2 + $0x70] sm:$0xff] }
  0x3f   : > { %v170_v17 = vld [vmem:[#allocation2 + $0x78] sm:$0xff] }
  0x43   : > { %172 = vxpose.xlu0.b32.cont [2/16] (narrow) %v156_v3, 64 }
  0x4b   : > { %173 = vxpose.xlu0.b32.cont [3/16] (narrow) %v157_v4, 64 }
  0x53   : > { %174 = vxpose.xlu0.b32.cont [4/16] (narrow) %v158_v5, 64 }
  0x5b   : > { %175 = vxpose.xlu0.b32.cont [5/16] (narrow) %v159_v6, 64 }
  0x63   : > { %176 = vxpose.xlu0.b32.cont [6/16] (narrow) %v160_v7, 64 }
  0x6b   : > { %177 = vxpose.xlu0.b32.cont [7/16] (narrow) %v161_v8, 64 }
  0x73   : > { %178 = vxpose.xlu0.b32.cont [8/16] (narrow) %v162_v9, 64 }
  0x7b   : > { %179 = vxpose.xlu0.b32.cont [9/16] (narrow) %v163_v10, 64 }
  0x83   : > { %180 = vxpose.xlu0.b32.cont [10/16] (narrow) %v164_v11, 64 }
  0x8b   : > { %181 = vxpose.xlu0.b32.cont [11/16] (narrow) %v165_v12, 64 }
  0x93   : > { %182 = vxpose.xlu0.b32.cont [12/16] (narrow) %v166_v13, 64 }
  0x9b   : > { %183 = vxpose.xlu0.b32.cont [13/16] (narrow) %v167_v14, 64 }
  0xa3   : > { %184 = vxpose.xlu0.b32.cont [14/16] (narrow) %v168_v15, 64 }
  0xab   : > { %185 = vxpose.xlu0.b32.cont [15/16] (narrow) %v169_v16, 64 }
  0xb3   : > { %186 = vxpose.xlu0.b32.end [16/16] (narrow) %v170_v17, 64 }
  0xdf   : > { %v187_v18 = vpop.trf.xlu0 }
  0xe0   : > { %203 = vst [vmem:[%s605_s15] sm:$0xff] %v187_v18 }
  0xe7   : > { %v188_v19 = vpop.trf.xlu0  ;;  %v264_v26 = vld [vmem:[%s605_s15] sm:$0xff] (%p586_p5) }
  0xe8   : > { %204 = vst [vmem:[%s605_s15 + $0x8] sm:$0xff] %v188_v19 }
  0xe9   : > { %265 = vst [vmem:[%s221_s29] sm:$0xff] (%p586_p5), %v264_v26 }
  0xef   : > { %v189_v20 = vpop.trf.xlu0  ;;  %v266_v27 = vld [vmem:[%s605_s15 + $0x8] sm:$0xff] (%p586_p5) }
  0xf0   : > { %205 = vst [vmem:[%s605_s15 + $0x10] sm:$0xff] %v189_v20 }
  0xf1   : > { %267 = vst [vmem:[%s221_s29 + $0x20] sm:$0xff] (%p586_p5), %v266_v27 }
  0xf7   : > { %v190_v21 = vpop.trf.xlu0  ;;  %v268_v28 = vld [vmem:[%s605_s15 + $0x10] sm:$0xff] (%p586_p5) }
  0xf8   : > { %206 = vst [vmem:[%s605_s15 + $0x18] sm:$0xff] %v190_v21 }
  0xf9   : > { %269 = vst [vmem:[%s221_s29 + $0x40] sm:$0xff] (%p586_p5), %v268_v28 }
  0xff   : > { %v191_v22 = vpop.trf.xlu0  ;;  %v270_v29 = vld [vmem:[%s605_s15 + $0x18] sm:$0xff] (%p586_p5) }
 0x100   : > { %207 = vst [vmem:[%s605_s15 + $0x20] sm:$0xff] %v191_v22 }
 0x101   : > { %271 = vst [vmem:[%s221_s29 + $0x60] sm:$0xff] (%p586_p5), %v270_v29 }
 0x107   : > { %v192_v23 = vpop.trf.xlu0  ;;  %v272_v30 = vld [vmem:[%s605_s15 + $0x20] sm:$0xff] (%p586_p5) }
 0x108   : > { %208 = vst [vmem:[%s605_s15 + $0x28] sm:$0xff] %v192_v23 }
 0x109   : > { %273 = vst [vmem:[%s221_s29 + $0x80] sm:$0xff] (%p586_p5), %v272_v30 }
 0x10f   : > { %v193_v24 = vpop.trf.xlu0  ;;  %v274_v31 = vld [vmem:[%s605_s15 + $0x28] sm:$0xff] (%p586_p5) }
 0x110   : > { %209 = vst [vmem:[%s605_s15 + $0x30] sm:$0xff] %v193_v24 }
 0x111   : > { %275 = vst [vmem:[%s221_s29 + $0xa0] sm:$0xff] (%p586_p5), %v274_v31 }
 0x114   : > { %217 = sbr.rel (!%p586_p5) target bundleno = 289 (0x121), region = 35 }
 0x117   : > { %v194_v25 = vpop.trf.xlu0  ;;  %v276_v32 = vld [vmem:[%s605_s15 + $0x30] sm:$0xff] (%p586_p5) }
 0x118   : > { %210 = vst [vmem:[%s605_s15 + $0x38] sm:$0xff] %v194_v25 }
 0x119   : > { %277 = vst [vmem:[%s221_s29 + $0xc0] sm:$0xff] %v276_v32 }
 0x11f   : > { %v278_v33 = vld [vmem:[%s605_s15 + $0x38] sm:$0xff] }
 0x120   : > { %279 = vst [vmem:[%s221_s29 + $0xe0] sm:$0xff] %v278_v33 }
 0x121 PF: > { %s26_s24 = sadd.s32 1, %s505_s24   ;;  %s663_s20 = smov %s485_s21 }
 0x122   : > { %p23_p11 = scmp.ge.s32.totalorder %s26_s24, 10   ;;  %s664_s21 = smov %s597_s6 }
 0x123   : > { %s665_s22 = smov %s497_s23  ;;  %s666_s0 = smov %s501_s1 }
 0x124   : > { %s667_s23 = smov %s670_s25  ;;  %s668_s1 = smov %s674_s26 }
 0x125   :  { %25 = sbr.rel (!%p23_p11) target bundleno = 11 (0xb), region = 109 }

</bundles_post_ra>
